<compile_context>
chip_gen: v5e
topology: v5e:2x2
jax: 0.10.0
libtpu: 0.0.40
codegen_flags: <defaults>
</compile_context>

<pallas_src>
import functools

import jax
import jax.numpy as jnp
from jax import lax
from jax.experimental import pallas as pl
from jax.experimental.pallas import tpu as pltpu

_LANES = 128
_VMEM_LIMIT = 32 * 1024 * 1024  # safe on v5e/v6e (128 MiB phys) and v7x (64 MiB)


def _fused_kernel(x_ref, o_ref, *, pad_correction):
    """Single pass: whole slab VMEM-resident; 1 HBM read + 1 HBM write."""
    t = jnp.maximum(x_ref[...].astype(jnp.float32), jnp.float32(10.0))
    # Zero pads contribute exactly 10.0 each after max(x, 10); subtract once.
    s = jnp.sum(t) - jnp.float32(pad_correction)
    o_ref[...] = (t * (jnp.float32(100.0) / s)).astype(o_ref.dtype)


def _partial_sum_kernel(x_ref, s_ref, *, valid_rows_last, pad_correction):
    """Pass 1: accumulate sum(max(x, 10)) into a resident (1, 1) block."""
    i = pl.program_id(0)
    last = pl.num_programs(0) - 1

    @pl.when(i == 0)
    def _():
        s_ref[...] = jnp.zeros_like(s_ref)

    t = jnp.maximum(x_ref[...].astype(jnp.float32), jnp.float32(10.0))

    @pl.when(i != last)
    def _():
        s_ref[...] += jnp.sum(t)

    @pl.when(i == last)
    def _():
        tl = t
        if valid_rows_last < t.shape[0]:  # static: only when last tile is ragged
            row = lax.broadcasted_iota(jnp.int32, t.shape, 0)
            tl = jnp.where(row < valid_rows_last, t, jnp.float32(0.0))
        s_ref[...] += jnp.sum(tl) - jnp.float32(pad_correction)


def _normalize_kernel(x_ref, s_ref, o_ref):
    """Pass 2: recompute the cheap threshold and write t * (100 / sum)."""
    t = jnp.maximum(x_ref[...].astype(jnp.float32), jnp.float32(10.0))
    scale = jnp.float32(100.0) / s_ref[...]          # exact, (1, 1) per tile
    o_ref[...] = (t * scale).astype(o_ref.dtype)


def fixed_threshold(x, *, max_tile_rows=4096, fused_max_rows=8192):
    """Pallas implementation of FixedThreshold.forward for any-shaped tensor."""
    orig_shape = x.shape
    orig_dtype = x.dtype
    total = x.size

    # Lane-dense layout: (rows, 128); pad only up to a multiple of 128 lanes.
    rows = -(-total // _LANES)
    lane_pad = rows * _LANES - total
    pad_correction = float(lane_pad) * 10.0

    x_flat = x.reshape(-1)
    if lane_pad:
        x_flat = jnp.pad(x_flat, (0, lane_pad))
    x2d = x_flat.reshape(rows, _LANES)

    if rows <= fused_max_rows:
        # --- Fused single-pass path (slab is VMEM-resident). ---
        out2d = pl.pallas_call(
            functools.partial(_fused_kernel, pad_correction=pad_correction),
            out_shape=jax.ShapeDtypeStruct((rows, _LANES), orig_dtype),
            compiler_params=pltpu.CompilerParams(vmem_limit_bytes=_VMEM_LIMIT),
        )(x2d)
    else:
        # --- Two-pass path for large tensors. ---
        tile_rows = max(8, (min(max_tile_rows, rows) // 8) * 8)
        grid_steps = -(-rows // tile_rows)
        valid_rows_last = rows - (grid_steps - 1) * tile_rows

        tile_spec = pl.BlockSpec((tile_rows, _LANES), lambda i: (i, 0))
        sum_spec = pl.BlockSpec((1, 1), lambda i: (0, 0))

        # Pass 1: global reduction (accumulator resident across the grid axis).
        s = pl.pallas_call(
            functools.partial(_partial_sum_kernel,
                              valid_rows_last=valid_rows_last,
                              pad_correction=pad_correction),
            out_shape=jax.ShapeDtypeStruct((1, 1), jnp.float32),
            grid=(grid_steps,),
            in_specs=[tile_spec],
            out_specs=sum_spec,
            compiler_params=pltpu.CompilerParams(
                dimension_semantics=("arbitrary",),
                vmem_limit_bytes=_VMEM_LIMIT),
        )(x2d)

        # Pass 2: elementwise normalize (embarrassingly parallel).
        out2d = pl.pallas_call(
            _normalize_kernel,
            out_shape=jax.ShapeDtypeStruct((rows, _LANES), orig_dtype),
            grid=(grid_steps,),
            in_specs=[tile_spec, sum_spec],
            out_specs=tile_spec,
            compiler_params=pltpu.CompilerParams(
                dimension_semantics=("parallel",),
                vmem_limit_bytes=_VMEM_LIMIT),
        )(x2d, s)

    out_flat = out2d.reshape(-1)
    if lane_pad:
        out_flat = out_flat[:total]
    return out_flat.reshape(orig_shape)


def _reference(x):
    t = jnp.maximum(x.astype(jnp.float32), 10.0)
    return (t / jnp.sum(t) * 100.0).astype(x.dtype)


def _check(x, **kwargs):
    out = jax.block_until_ready(fixed_threshold(x, **kwargs))
    ref = _reference(x)
    assert out.shape == x.shape and out.dtype == x.dtype
    assert jnp.allclose(out, ref, rtol=1e-5, atol=1e-6), (
        f"mismatch vs reference, max abs err {jnp.max(jnp.abs(out - ref))}")


if __name__ == "__main__":
    key = jax.random.PRNGKey(0)
    k0, k1, k2 = jax.random.split(key, 3)

    # Small NCHW activation map (fused single-pass path, zero padding copies).
    x0 = jax.random.normal(k0, (2, 4, 16, 16), dtype=jnp.float32) * 20.0
    _check(x0)

    # Non-128-divisible size (fused path with lane padding + static correction).
    x1 = jax.random.normal(k1, (3, 5, 7, 9), dtype=jnp.float32) * 15.0
    _check(x1)

    # Force the tiled two-pass path on small data (resident (1,1) accumulator,
    # evenly divided grid).
    _check(x0, max_tile_rows=8, fused_max_rows=0)

    # Force the two-pass path with a ragged last tile AND lane padding
    # (exercises the pl.when row mask and the pad-count correction).
    x2 = jax.random.normal(k2, (2, 4, 20, 17), dtype=jnp.float32) * 20.0
    _check(x2, max_tile_rows=8, fused_max_rows=0)

    print("KERNEL_OK")
</pallas_src>

<mosaic_0001>
module attributes {stable_mosaic.version = 11 : i64} {
  func.func @_fused_kernel(%arg0: memref<16x128xf32, #tpu.memory_space<vmem>>, %arg1: memref<16x128xf32, #tpu.memory_space<vmem>>) attributes {dimension_semantics = [], scalar_prefetch = 0 : i64, scratch_operands = 0 : i64, tpu.core_type = #tpu.core_type<tc>} {
    %c0 = arith.constant 0 : index
    %c0_0 = arith.constant 0 : index
    %0 = vector.load %arg0[%c0, %c0_0] : memref<16x128xf32, #tpu.memory_space<vmem>>, vector<16x128xf32>
    %cst = arith.constant 1.000000e+01 : f32
    %1 = vector.broadcast %cst : f32 to vector<16x128xf32>
    %2 = arith.maximumf %0, %1 : vector<16x128xf32>
    %3 = vector.shape_cast %2 : vector<16x128xf32> to vector<1x16x128xf32>
    %cst_1 = arith.constant dense<0.000000e+00> : vector<1xf32>
    %4 = vector.multi_reduction <add>, %3, %cst_1 [1, 2] : vector<1x16x128xf32> to vector<1xf32>
    %5 = vector.shape_cast %4 : vector<1xf32> to vector<1x1x1xf32>
    %6 = vector.extract %5[0, 0, 0] : f32 from vector<1x1x1xf32>
    %cst_2 = arith.constant 0.000000e+00 : f32
    %7 = arith.subf %6, %cst_2 : f32
    %cst_3 = arith.constant 1.000000e+02 : f32
    %8 = arith.divf %cst_3, %7 : f32
    %9 = vector.broadcast %8 : f32 to vector<16x128xf32>
    %10 = arith.mulf %2, %9 : vector<16x128xf32>
    %c0_4 = arith.constant 0 : index
    %c0_5 = arith.constant 0 : index
    %11 = vector.load %arg1[%c0_4, %c0_5] : memref<16x128xf32, #tpu.memory_space<vmem>>, vector<16x128xf32>
    tpu.vector_store %arg1[%c0_4, %c0_5], %10 {strides = array<i32>} : memref<16x128xf32, #tpu.memory_space<vmem>>, vector<16x128xf32>,
    return
  }
}

</mosaic_0001>

<bundles_post_ra>
// kernel: tpu_custom_call.1
= control target key start
LH: loop header
LB: loop body
LE: loop exit
PB: predicated region body
PF: predicated region fallthrough
CT: control target
= control target key end

     0   :  { %6 = vsyncpa [#allocation3], 0  ;;  %s168_s0 = inlined_call_operand.hbm [shape: f32[16,128], index: 0, kind: input, shape index: {}]   ;;  %s169_s1 = inlined_call_operand.hbm [shape: f32[16,128], index: 1, kind: output, shape index: {}]  }
   0x1   :  { %7 = vsyncpa [#allocation4], 0  ;;  %s12_s8 = sshll.u32 %s168_s0, 4  ;;  %s142_s9 = smov [#allocation2]   ;;  %s13_s8 = int_to_ptr.hbm [resolvable:$true] %s12_s8 }
   0x2   :  { %s14_s10 = sshll.u32 %s142_s9, 4  ;;  %s143_s11 = smov 128   ;;  %s15_s10 = int_to_ptr.vmem [resolvable:$true] %s14_s10 }
   0x3   :  { %s144_s12 = smov 8  }
   0x4   :  { %20 = dma.hbm_to_vmem [thread:$0]  %s13_s8, 256, %s15_s10, [#allocation3], %s143_s11, %s143_s11, %s144_s12  }
   0x5   :  { %138 = dma.done.wait [#allocation3], 256  }
   0x6   :  { %139 = vsyncadd [#allocation3], 4294967040  ;;  %v25_v0 = vld [vmem:[#allocation2] sm:$0xff]  ;;  %v26_v1 = vld [vmem:[#allocation2 + $0x8] sm:$0xff]  ;;  %s145_s15 = smov [#allocation5]   ;;  %s67_s19 = sshll.u32 %s169_s1, 4  ;;  %s68_s19 = int_to_ptr.hbm [resolvable:$true] %s67_s19 }
   0x7   :  { %v27_v2 = vmax.f32 %v25_v0, 10.0  ;;  %v28_v3 = vmax.f32 %v26_v1, 10.0  ;;  %s65_s16 = sshll.u32 %s145_s15, 4  ;;  %s66_s16 = int_to_ptr.vmem [resolvable:$true] %s65_s16 }
   0x9   :  { %v29_v4 = vadd.f32 %v28_v3, %v27_v2 }
   0xb   :  { %30 = vadd.xlane.f32.xlu0 %v29_v4 }
  0x7e   :  { %v31_v5 = vpop.xlane.xlu0 %30 }
  0x7f   :  { %v32_v6 = vrot.slane %v31_v5, 4 }
  0x81   :  { %v33_v7 = vadd.f32 %v32_v6, %v31_v5 }
  0x83   :  { %v34_v8 = vrot.slane %v33_v7, 2 }
  0x85   :  { %v35_v9 = vadd.f32 %v34_v8, %v33_v7 }
  0x87   :  { %v36_v10 = vrot.slane %v35_v9, 1 }
  0x89   :  { %v37_v11 = vadd.f32 %v36_v10, %v35_v9 }
  0x8b   :  { %80 = vpush %v37_v11 }
  0xbc   :  { %s81_s0 = spop %80 }
  0xbd   :  { %v39_v12 = vstv %s81_s0 }
  0xbe   :  { %88 = vrcp.f32 %v39_v12  ;;  %v51_v16 = vand.u32 2147483648, %v39_v12  ;;  %v49_v18 = vand.u32 2147483647, %v39_v12  ;;  %vm45_vm1 = vweird.f32 %v39_v12 }
  0xc0   :  { %v52_v20 = vor.u32 1.1754944e-38, %v51_v16  ;;  %vm50_vm3 = vcmp.eq.f32.partialorder %v49_v18, 8.507059e+37 }
  0xc4   :  { %v89_v13 = vpop.eup %88 }
  0xc5   :  { %v41_v14 = vmul.f32 %v89_v13, %v39_v12  ;;  %vm46_vm0 = vweird.f32 %v89_v13 }
  0xc6   :  { %vm47_vm2 = vmor %vm45_vm1, %vm46_vm0 }
  0xc7   :  { %v42_v15 = vsub.f32 1.0, %v41_v14 }
  0xc9   :  { %v43_v17 = vmul.f32 %v89_v13, %v42_v15 }
  0xcb   :  { %v44_v19 = vadd.f32 %v89_v13, %v43_v17 }
  0xcd   :  { %v48_v21 = vsel %vm47_vm2, %v89_v13, %v44_v19 }
  0xce   :  { %v53_v22 = vsel %vm50_vm3, %v52_v20, %v48_v21 }
  0xcf   :  { %82 = vpush %v53_v22 }
 0x100   :  { %s83_s13 = spop %82 }
 0x101   :  { %s55_s14 = smul.f32 100.0, %s83_s13 }
 0x103   :  { %v56_v23 = vstv %s55_s14 }
 0x104   :  { %v57_v24 = vmul.f32 %v56_v23, %v27_v2  ;;  %v58_v25 = vmul.f32 %v56_v23, %v28_v3 }
 0x106   :  { %59 = vst [vmem:[#allocation5] sm:$0xff] %v57_v24 }
 0x107   :  { %60 = vst [vmem:[#allocation5 + $0x8] sm:$0xff] %v58_v25 }
 0x108   :  { %73 = dma.vmem_to_hbm [thread:$0]  %s66_s16, 256, %s68_s19, [#allocation4], %s143_s11, %s143_s11, %s144_s12  }
 0x109   :  { %140 = dma.done.wait [#allocation4], 256  }
 0x10a   :  { %141 = vsyncadd [#allocation4], 4294967040 }
 0x10b   :  { %78 = vsyncpa [#allocation3], 1 }
 0x10c   :  { %79 = vsyncpa [#allocation4], 1 }

</bundles_post_ra>
